<compile_context>
chip_gen: v7x
topology: tpu7x:2x2x1
jax: 0.10.0
libtpu: 0.0.40
codegen_flags: <defaults>
</compile_context>

<pallas_src>
import jax
import jax.numpy as jnp
from jax import lax
from jax.experimental import pallas as pl
from jax.experimental.pallas import tpu as pltpu

_LANE = 128
_SUBLANE = 8


def _round_up(n, m):
    return ((n + m - 1) // m) * m


def _cdiv(a, b):
    return (a + b - 1) // b


def _mlp_kernel(x_ref, w1_ref, b1_ref, w2_ref, b2_ref, o_ref):
    # fc1: (TB, dim) @ (dim, Hp) on the MXU; bias + ReLU on the VPU in f32.
    h = jnp.dot(x_ref[...], w1_ref[...], preferred_element_type=jnp.float32)
    h = jnp.maximum(h + b1_ref[...], 0.0)

    # fc2 as (8, Hp) . (TB, Hp)^T -> (8, TB).  Row 0 of w2_ref is the real
    # weight row, rows 1..7 are zero sublane padding.  Batch lands on the lane
    # axis -> lane-dense (1, TB) output store, and the MXU pass has N=TB.
    # If at large TB Mosaic emits an explicit vxpose of h it rides the
    # otherwise-idle XLU slot and stays hidden under the x DMA.
    out8 = lax.dot_general(
        w2_ref[...], h,
        dimension_numbers=(((1,), (1,)), ((), ())),
        preferred_element_type=jnp.float32,
    )
    out_row = out8[0:1, :] + b2_ref[0, 0]            # (1, TB); b2 from SMEM
    o_ref[...] = out_row[None].astype(o_ref.dtype)   # (1, 1, TB)


def prepare_params(w1, b1, w2, b2, *, in_dtype=jnp.float32):
    """Pad/reshape weights ONCE (hoist out of any per-step decision loop).

    w1: (dim, H);  b1: (1, H) or (H,);  w2: (H, 1) or (H,);  b2: scalar-ish.
    Zero padding of the hidden dim (H -> Hp) is a mathematical no-op:
    padded hidden units see ReLU(0)=0 and multiply zero fc2 weights.
    """
    dim, H = w1.shape
    Hp = _round_up(H, _LANE)                                   # hidden 100 -> 128
    w1p = jnp.pad(jnp.asarray(w1, in_dtype), ((0, 0), (0, Hp - H)))
    b1p = jnp.pad(jnp.asarray(b1, jnp.float32).reshape(1, H), ((0, 0), (0, Hp - H)))
    # w2 as an (8, Hp) row block: row 0 = w2^T, rows 1..7 zero (sublane padding).
    w2p = jnp.pad(jnp.asarray(w2, jnp.float32).reshape(H, 1).T,
                  ((0, _SUBLANE - 1), (0, Hp - H)))
    b2p = jnp.asarray(b2, jnp.float32).reshape(1, 1)
    return {"w1p": w1p, "b1p": b1p, "w2p": w2p, "b2p": b2p,
            "dim": dim, "Hp": Hp, "in_dtype": in_dtype}


def _choose_tile(B, cap):
    if B < _LANE:
        # Tiny batch: single tile, sublane-rounded (masked store is irrelevant here).
        return _round_up(B, _SUBLANE)
    # Lane-rounded; big enough to amortize per-step overhead, small enough that
    # (a) large B still gives >= 2 tiles for v7x's two TensorCores and
    # (b) the working set stays inside v5e's 16 MiB default scoped VMEM.
    tb = _round_up(_cdiv(B, 2), _LANE)
    return max(_LANE, min(cap, tb))


def forward_prepared(x, params, *, tile_b_cap=4096):
    """Forward pass fc2(ReLU(fc1(x))) with pre-padded params.  Returns (B, 1) f32."""
    B = x.shape[0]
    dim, Hp = params["dim"], params["Hp"]
    tb = _choose_tile(B, tile_b_cap)
    num_tiles = _cdiv(B, tb)

    xin = jnp.asarray(x, params["in_dtype"])   # no batch padding: tail tile reads
                                               # don't-care rows that [:B] discards.
    out = pl.pallas_call(
        _mlp_kernel,
        out_shape=jax.ShapeDtypeStruct((num_tiles, 1, tb), jnp.float32),
        grid=(num_tiles,),
        in_specs=[
            pl.BlockSpec((tb, dim), lambda i: (i, 0)),            # x: batch-tiled
            pl.BlockSpec((dim, Hp), lambda i: (0, 0)),            # w1: VMEM-resident
            pl.BlockSpec((1, Hp), lambda i: (0, 0)),              # b1: VMEM-resident
            pl.BlockSpec((_SUBLANE, Hp), lambda i: (0, 0)),       # w2 row block: resident
            pl.BlockSpec(memory_space=pltpu.MemorySpace.SMEM),    # b2: scalar in SMEM
        ],
        out_specs=pl.BlockSpec((1, 1, tb), lambda i: (i, 0, 0)),  # lane-dense output
        compiler_params=pltpu.CompilerParams(
            dimension_semantics=("parallel",),                    # v7x: 2 TCs share batch
        ),
    )(xin, params["w1p"], params["b1p"], params["w2p"], params["b2p"])

    # (num_tiles, 1, tb) row-major flatten preserves batch order; drop tail rows.
    return out.reshape(num_tiles * tb, 1)[:B]


def network_decision_maker_forward(x, w1, b1, w2, b2, *, tile_b_cap=4096,
                                   in_dtype=jnp.float32):
    """Convenience wrapper (pads weights per call; prefer prepare_params + forward_prepared)."""
    params = prepare_params(w1, b1, w2, b2, in_dtype=in_dtype)
    return forward_prepared(x, params, tile_b_cap=tile_b_cap)


def init_params(key, dim, hidden_size=100):
    """PyTorch nn.Linear-style init: U[-1/sqrt(fan_in), 1/sqrt(fan_in)]."""
    k1, k2, k3, k4 = jax.random.split(key, 4)
    bound1 = 1.0 / jnp.sqrt(dim)
    bound2 = 1.0 / jnp.sqrt(hidden_size)
    w1 = jax.random.uniform(k1, (dim, hidden_size), jnp.float32, -bound1, bound1)
    b1 = jax.random.uniform(k2, (1, hidden_size), jnp.float32, -bound1, bound1)
    w2 = jax.random.uniform(k3, (hidden_size, 1), jnp.float32, -bound2, bound2)
    b2 = jax.random.uniform(k4, (1, 1), jnp.float32, -bound2, bound2)
    return w1, b1, w2, b2


if __name__ == "__main__":
    key = jax.random.PRNGKey(0)
    k_x, k_x2, k_p = jax.random.split(key, 3)

    dim, hidden = 32, 100
    w1, b1, w2, b2 = init_params(k_p, dim, hidden)
    params = prepare_params(w1, b1, w2, b2)           # padded once, reused below

    def ref_fwd(x):
        return jnp.maximum(x @ w1 + b1, 0.0) @ w2 + b2

    # Tiny, module-like batch (single tile, sublane-rounded).
    x_small = jax.random.normal(k_x, (8, dim), jnp.float32)
    out_small = jax.block_until_ready(forward_prepared(x_small, params))
    assert out_small.shape == (8, 1)
    assert jnp.allclose(out_small, ref_fwd(x_small), atol=1e-4, rtol=1e-4)

    # Larger, non-tile-multiple batch: exercises the cdiv grid with a ragged
    # tail tile (no host-side batch padding) and the 2-tile "parallel" path.
    x_big = jax.random.normal(k_x2, (200, dim), jnp.float32)
    out_big = jax.block_until_ready(forward_prepared(x_big, params))
    assert out_big.shape == (200, 1)
    assert jnp.allclose(out_big, ref_fwd(x_big), atol=1e-4, rtol=1e-4)

    # Convenience wrapper (same semantics).
    out_wrap = jax.block_until_ready(
        network_decision_maker_forward(x_big, w1, b1, w2, b2))
    assert jnp.allclose(out_wrap, out_big, atol=1e-5, rtol=1e-5)

    print("KERNEL_OK")
</pallas_src>

<mosaic_0001>
module attributes {stable_mosaic.version = 11 : i64} {
  func.func @_mlp_kernel(%arg0: i32, %arg1: memref<8x32xf32, #tpu.memory_space<vmem>>, %arg2: memref<32x128xf32, #tpu.memory_space<vmem>>, %arg3: memref<1x128xf32, #tpu.memory_space<vmem>>, %arg4: memref<8x128xf32, #tpu.memory_space<vmem>>, %arg5: memref<1x1xf32, #tpu.memory_space<smem>>, %arg6: memref<1x1x8xf32, #tpu.memory_space<vmem>>) attributes {dimension_semantics = [#tpu.dimension_semantics<parallel>], iteration_bounds = array<i64: 1>, scalar_prefetch = 0 : i64, scratch_operands = 0 : i64, tpu.core_type = #tpu.core_type<tc>, window_params = [{transform_indices = @transform_0, window_bounds = array<i64: 8, 32>}, {pipeline_mode = #tpu.pipeline_mode<synchronous>, transform_indices = @transform_1, window_bounds = array<i64: 32, 128>}, {pipeline_mode = #tpu.pipeline_mode<synchronous>, transform_indices = @transform_2, window_bounds = array<i64: 1, 128>}, {pipeline_mode = #tpu.pipeline_mode<synchronous>, transform_indices = @transform_3, window_bounds = array<i64: 8, 128>}, {transform_indices = @transform_4, window_bounds = array<i64: 1, 1>}, {transform_indices = @transform_5, window_bounds = array<i64: 1, 1, 8>}]} {
    %c0 = arith.constant 0 : index
    %c0_0 = arith.constant 0 : index
    %0 = vector.load %arg1[%c0, %c0_0] : memref<8x32xf32, #tpu.memory_space<vmem>>, vector<8x32xf32>
    %c0_1 = arith.constant 0 : index
    %c0_2 = arith.constant 0 : index
    %1 = vector.load %arg2[%c0_1, %c0_2] : memref<32x128xf32, #tpu.memory_space<vmem>>, vector<32x128xf32>
    %cst = arith.constant dense<0.000000e+00> : vector<8x128xf32>
    %2 = tpu.matmul %0, %1, %cst {dimension_numbers = #tpu.dot_dimension_numbers<[1], [0], [0], [1], [0, 0, 1, 1], [], []>} : vector<8x32xf32>, vector<32x128xf32>, vector<8x128xf32> -> vector<8x128xf32>
    %c0_3 = arith.constant 0 : index
    %c0_4 = arith.constant 0 : index
    %3 = vector.load %arg3[%c0_3, %c0_4] : memref<1x128xf32, #tpu.memory_space<vmem>>, vector<1x128xf32>
    %4 = vector.broadcast %3 : vector<1x128xf32> to vector<8x128xf32>
    %5 = arith.addf %2, %4 : vector<8x128xf32>
    %cst_5 = arith.constant 0.000000e+00 : f32
    %6 = vector.broadcast %cst_5 : f32 to vector<8x128xf32>
    %7 = arith.maximumf %5, %6 : vector<8x128xf32>
    %c0_6 = arith.constant 0 : index
    %c0_7 = arith.constant 0 : index
    %8 = vector.load %arg4[%c0_6, %c0_7] : memref<8x128xf32, #tpu.memory_space<vmem>>, vector<8x128xf32>
    %cst_8 = arith.constant dense<0.000000e+00> : vector<8x8xf32>
    %9 = tpu.matmul %8, %7, %cst_8 {dimension_numbers = #tpu.dot_dimension_numbers<[1], [1], [0], [0], [0, 0, 1, 0], [], []>} : vector<8x128xf32>, vector<8x128xf32>, vector<8x8xf32> -> vector<8x8xf32>
    %10 = vector.extract_strided_slice %9 {offsets = [0, 0], sizes = [1, 8], strides = [1, 1]} : vector<8x8xf32> to vector<1x8xf32>
    %c0_9 = arith.constant 0 : index
    %c0_10 = arith.constant 0 : index
    %11 = memref.load %arg5[%c0_9, %c0_10] : memref<1x1xf32, #tpu.memory_space<smem>>
    %12 = vector.broadcast %11 : f32 to vector<1x8xf32>
    %13 = arith.addf %10, %12 : vector<1x8xf32>
    %14 = vector.shape_cast %13 : vector<1x8xf32> to vector<1x1x8xf32>
    %c0_11 = arith.constant 0 : index
    %c0_12 = arith.constant 0 : index
    %c0_13 = arith.constant 0 : index
    %15 = vector.load %arg6[%c0_11, %c0_12, %c0_13] : memref<1x1x8xf32, #tpu.memory_space<vmem>>, vector<1x1x8xf32>
    tpu.vector_store %arg6[%c0_11, %c0_12, %c0_13], %14 {strides = array<i32>} : memref<1x1x8xf32, #tpu.memory_space<vmem>>, vector<1x1x8xf32>,
    return
  }
  func.func @transform_0(%arg0: i32) -> (i32, i32) {
    %c0_i32 = arith.constant 0 : i32
    %c0_i32_0 = arith.constant 0 : i32
    return %arg0, %c0_i32 : i32, i32
  }
  func.func @transform_1(%arg0: i32) -> (i32, i32) {
    %c0_i32 = arith.constant 0 : i32
    %c0_i32_0 = arith.constant 0 : i32
    %c0_i32_1 = arith.constant 0 : i32
    return %c0_i32, %c0_i32_0 : i32, i32
  }
  func.func @transform_2(%arg0: i32) -> (i32, i32) {
    %c0_i32 = arith.constant 0 : i32
    %c0_i32_0 = arith.constant 0 : i32
    %c0_i32_1 = arith.constant 0 : i32
    return %c0_i32, %c0_i32_0 : i32, i32
  }
  func.func @transform_3(%arg0: i32) -> (i32, i32) {
    %c0_i32 = arith.constant 0 : i32
    %c0_i32_0 = arith.constant 0 : i32
    %c0_i32_1 = arith.constant 0 : i32
    return %c0_i32, %c0_i32_0 : i32, i32
  }
  func.func @transform_4(%arg0: i32) -> (i32, i32) {
    %c0_i32 = arith.constant 0 : i32
    %c0_i32_0 = arith.constant 0 : i32
    %c0_i32_1 = arith.constant 0 : i32
    return %c0_i32, %c0_i32_0 : i32, i32
  }
  func.func @transform_5(%arg0: i32) -> (i32, i32, i32) {
    %c0_i32 = arith.constant 0 : i32
    %c0_i32_0 = arith.constant 0 : i32
    %c0_i32_1 = arith.constant 0 : i32
    return %arg0, %c0_i32, %c0_i32_0 : i32, i32, i32
  }
}

</mosaic_0001>

<bundles_post_ra>
// kernel: tpu_custom_call.1
= control target key start
LH: loop header
LB: loop body
LE: loop exit
PB: predicated region body
PF: predicated region fallthrough
CT: control target
= control target key end

     0   :  { %11 = vsyncpa [#allocation4], 0  ;;  %s428_s0 = inlined_call_operand.hbm [shape: f32[8,32], index: 0, kind: input, shape index: {}]   ;;  %s429_s1 = inlined_call_operand.hbm [shape: f32[32,128], index: 1, kind: input, shape index: {}]   ;;  %s430_s2 = inlined_call_operand.vmem [shape: f32[1,128], index: 2, kind: input, shape index: {}]   ;;  %s431_s3 = inlined_call_operand.vmem [shape: f32[8,128], index: 3, kind: input, shape index: {}]   ;;  %s432_s4 = inlined_call_operand.<no memory space> [shape: f32[1,1], index: 4, kind: input, shape index: {}]   ;;  %s433_s5 = inlined_call_operand.hbm [shape: f32[1,1,8], index: 5, kind: output, shape index: {}]  }
   0x1   :  { %12 = vsyncpa [#allocation7], 0 }
   0x2   :  { %13 = vsyncpa [#allocation5], 0  ;;  %s338_s18 = smov [#allocation3]   ;;  %s339_s20 = smov [#allocation6]  }
   0x3   :  { %s20_s19 = sshll.u32 %s338_s18, 4  ;;  %s29_s21 = sshll.u32 %s339_s20, 4  ;;  %s21_s19 = int_to_ptr.vmem [resolvable:$true] %s20_s19  ;;  %s376_s21 = int_to_ptr.vmem [resolvable:$true] %s29_s21 }
   0x4   :  { %s266_s24 = scalar_lea.hbm %s428_s0, 128 }
   0x5   :  { %p267_p0 = scmp.ne.s32.totalorder %s428_s0, %s266_s24  ;;  %p270_p1 = scmp.lt.u32.totalorder %s266_s24, %s428_s0 }
   0x7   :  { %p272_p2 = pnand %p270_p1, %p267_p0 }
   0x9   :  { %275 = shalt.err (!%p272_p2)
}
   0xa   :  { %s276_s29 = scalar_lea.vmem %s21_s19, 128  ;;  %p281_p4 = scmp.lt.s32.totalorder %s21_s19, %s21_s19 }
   0xb   :  { %p277_p3 = scmp.ne.s32.totalorder %s21_s19, %s276_s29  ;;  %p282_p5 = scmp.lt.s32.totalorder %s276_s29, %s276_s29 }
   0xd   :  { %p283_p6 = por %p282_p5, %p281_p4 }
   0xf   :  { %p284_p7 = pnand %p283_p6, %p277_p3 }
  0x11   :  { %287 = shalt.err (!%p284_p7)
}
  0x12   :  { %23 = dma.hbm_to_vmem [thread:$0]  %s428_s0, 128, %s21_s19, [#allocation4]  }
  0x13   :  { %s288_s9 = scalar_lea.hbm %s429_s1, 512 }
  0x14   :  { %p289_p8 = scmp.ne.s32.totalorder %s429_s1, %s288_s9  ;;  %p292_p9 = scmp.lt.u32.totalorder %s288_s9, %s429_s1 }
  0x16   :  { %p294_p10 = pnand %p292_p9, %p289_p8 }
  0x18   :  { %297 = shalt.err (!%p294_p10)
}
  0x19   :  { %s298_s14 = scalar_lea.vmem %s376_s21, 512  ;;  %p303_p12 = scmp.lt.s32.totalorder %s376_s21, %s376_s21 }
  0x1a   :  { %p299_p11 = scmp.ne.s32.totalorder %s376_s21, %s298_s14  ;;  %p304_p13 = scmp.lt.s32.totalorder %s298_s14, %s298_s14 }
  0x1c   :  { %p305_p0 = por %p304_p13, %p303_p12 }
  0x1e   :  { %p306_p1 = pnand %p305_p0, %p299_p11 }
  0x20   :  { %309 = shalt.err (!%p306_p1)
}
  0x21   :  { %s340_s0 = smov 128   ;;  %s341_s15 = smov 8  }
  0x22   :  { %35 = dma.hbm_to_vmem [thread:$0]  %s429_s1, 512, %s376_s21, [#allocation7], %s340_s0, %s340_s0, %s341_s15  }
  0x23   :  { %332 = dma.done.wait [#allocation4], 128  }
  0x24   :  { %333 = vsyncadd [#allocation4], 4294967168 }
  0x25   :  { %334 = dma.done.wait [#allocation7], 512  }
  0x26   :  { %335 = vsyncadd [#allocation7], 4294966784  ;;  %v342_v0 = vmov 0.0|0.0   ;;  %vm343_vm0 = vmmov 0   ;;  %v344_v1 = vmov 0.0   ;;  %v49_v2 = vld [vmem:[#allocation6] sm:$0xff]  ;;  %v207_v15 = vstv %s432_s4 }
  0x27   :  { %252 = vmatprep.subr.bf16.mxu0 %v342_v0  ;;  %244 = vmatprep.mubr.msk.f32.mxu0 %vm343_vm0, %v344_v1  ;;  %v50_v3 = vld [vmem:[#allocation6 + $0x8] sm:$0xff]  ;;  %v51_v4 = vld [vmem:[#allocation6 + $0x10] sm:$0xff]  ;;  %v52_v6 = vld [vmem:[#allocation6 + $0x18] sm:$0xff]  ;;  %vm60_vm1 = vcmask 261120   ;;  %s345_s23 = smov [#allocation8]   ;;  %vm209_vm2 = vcmask 57344  }
  0x28   :  { %247 = vmatprep.subr.mxu1 %v344_v1  ;;  %249 = vmatprep.mubr.msk.f32.mxu1 %vm343_vm0, %v344_v1  ;;  %v253_v5 = vpack.c.bf16 %v50_v3, %v49_v2  ;;  %v256_v7 = vpack.c.bf16 %v52_v6, %v51_v4  ;;  %v48_v8 = vld [vmem:[#allocation3] sm:$0xff]  ;;  %s217_s24 = sshll.u32 %s345_s23, 4  ;;  %s218_s24 = int_to_ptr.vmem [resolvable:$true] %s217_s24 }
  0x29   :  { %v227_v9 = vld [vmem:[%s430_s2] ss:$0 sm:$0xff]  ;;  %s310_s2 = scalar_lea.vmem %s218_s24, 16  ;;  %s314_s25 = scalar_lea.vmem %s218_s24, 32 }
  0x2a   :  { %254 = vmatpush3.bf16.msra.mxu0 %v253_v5  ;;  %v135_v14 = vld [vmem:[%s431_s3] sm:$0xff]  ;;  %p311_p2 = scmp.ne.s32.totalorder %s218_s24, %s310_s2  ;;  %p315_p3 = scmp.lt.s32.totalorder %s218_s24, %s218_s24 }
  0x2b   :  { %255 = vmatprep.subr.bf16.mxu0 %v342_v0  ;;  %p316_p4 = scmp.lt.s32.totalorder %s314_s25, %s310_s2 }
  0x2d   :  { %p317_p5 = por %p316_p4, %p315_p3 }
  0x2e   :  { %257 = vmatpush3.bf16.msra.mxu0 %v256_v7 }
  0x2f   :  { %p318_p6 = pnand %p317_p5, %p311_p2 }
  0x31   :  { %245 = vmatmul.mubr.msk.f32.vlgmr.msra.gmra.mrb[0].mxu0 %vm60_vm1, %v48_v8 }
 0x104   :  { %v130_v10 = vpop.f32.mrb[0].mxu0 }
 0x105   :  { %v131_v11 = vadd.f32 %v227_v9, %v130_v10  ;;  %v246_v12 = vpop.f32.mrb[1].mxu0 }
 0x107   :  { %v134_v13 = vmax.f32 %v131_v11, 0.0 }
 0x109   :  { %248 = vmatpush3.xpose.msra.mxu1 %v134_v13 }
 0x10c   :  { %250 = vmatmul.mubr.f32.vlgmr.msra.gmra.mrb[0].mxu1 %v135_v14 }
 0x1df   :  { %v202_v16 = vpop.f32.mrb[0].mxu1 }
 0x1e0   :  { %v208_v17 = vadd.f32 %v207_v15, %v202_v16  ;;  %v251_v18 = vpop.f32.mrb[1].mxu1 }
 0x1e2   :  { %210 = vst.msk [vmem:[#allocation8] sm:$0x1] %vm209_vm2, %v208_v17 }
 0x1e3   :  { %321 = shalt.err (!%p318_p6)
}
 0x1e4   :  { %s322_s4 = scalar_lea.hbm %s433_s5, 16 }
 0x1e5   :  { %p323_p7 = scmp.ne.s32.totalorder %s433_s5, %s322_s4  ;;  %p326_p8 = scmp.lt.u32.totalorder %s322_s4, %s433_s5 }
 0x1e7   :  { %p328_p9 = pnand %p326_p8, %p323_p7 }
 0x1e9   :  { %331 = shalt.err (!%p328_p9)
}
 0x1ea   :  { %220 = dma.vmem_to_hbm [thread:$0]  %s218_s24, 16, %s433_s5, [#allocation5]  }
 0x1eb   :  { %336 = dma.done.wait [#allocation5], 16  }
 0x1ec   :  { %337 = vsyncadd [#allocation5], 4294967280 }
 0x1ed   :  { %224 = vsyncpa [#allocation4], 1 }
 0x1ee   :  { %225 = vsyncpa [#allocation7], 1 }
 0x1ef   :  { %226 = vsyncpa [#allocation5], 1 }

</bundles_post_ra>
